<compile_context>
chip_gen: v7x
topology: tpu7x:2x2x1
jax: 0.10.0
libtpu: 0.0.40
codegen_flags: <defaults>
</compile_context>

<pallas_src>
import functools

import jax
import jax.numpy as jnp
from jax import lax
from jax.experimental import pallas as pl
from jax.experimental.pallas import tpu as pltpu  # noqa: F401  (TPU backend namespace)


def _round_up(x, m):
    return ((x + m - 1) // m) * m


def cpa_kernel(feat_ref, pos_ref,
               w1_ref, b1_ref, w2_ref, b2_ref, w3_ref, b3_ref,
               out_ref, *, d_valid):
    B, N, Dp = feat_ref.shape
    Tp = pos_ref.shape[1]

    # mean over the N axis as sum * (1/N) with a compile-time constant.
    fm = jnp.sum(feat_ref[...], axis=1) * (1.0 / N)                     # (B, Dp)

    # fc1 on all batch means at once: (B, Dp) @ (Dp, Dp).
    x1 = jnp.dot(fm, w1_ref[...],
                 preferred_element_type=jnp.float32) + b1_ref[...]      # (B, Dp)

    # Broadcast-add positional embedding -> (B, Tp, Dp); flatten rows (tile-aligned).
    x = x1[:, None, :] + pos_ref[...]                                   # (B, Tp, Dp)
    xf = x.reshape(B * Tp, Dp)                                          # (B*Tp, Dp)

    # softmax(fc2(tanh(x)), axis=-1), masked to the real (unpadded) channels.
    t = jnp.tanh(xf)
    y = jnp.dot(t, w2_ref[...],
                preferred_element_type=jnp.float32) + b2_ref[...]       # (B*Tp, Dp)
    if d_valid < Dp:
        lane = lax.broadcasted_iota(jnp.int32, y.shape, 1)
        y = jnp.where(lane < d_valid, y, -1e30)
    y = y - jnp.max(y, axis=-1, keepdims=True)
    p = jnp.exp(y)
    p = p * pl.reciprocal(jnp.sum(p, axis=-1, keepdims=True), approx=True)

    # fc3(fm * p): broadcast each batch mean over its Tp rows.
    fm_rows = jnp.broadcast_to(fm[:, None, :], (B, Tp, Dp)).reshape(B * Tp, Dp)
    z = fm_rows * p
    out = jnp.dot(z, w3_ref[...],
                  preferred_element_type=jnp.float32) + b3_ref[...]     # (B*Tp, Dp)
    out_ref[...] = out.reshape(B, Tp, Dp).astype(out_ref.dtype)


def cpa_forward(feat, pos_embed, w1, b1, w2, b2, w3, b3):
    """feat: [B, N, D] float32; weights already [in, out] = W^T; biases [1, D]."""
    B, N, D = feat.shape
    T = pos_embed.shape[1]

    Dp = _round_up(D, 128)   # lane-dense channel axis
    Tp = _round_up(T, 8)     # sublane-aligned seq axis (tile-aligned reshapes)
    dp, tp = Dp - D, Tp - T

    # Zero-padding keeps the math exact: padded weight rows/cols and biases are 0,
    # and the softmax is explicitly masked to the first D channels in-kernel.
    feat_p = jnp.pad(feat, ((0, 0), (0, 0), (0, dp)))
    pos_p = jnp.pad(pos_embed, ((0, 0), (0, tp), (0, dp)))
    w1_p = jnp.pad(w1, ((0, dp), (0, dp)))
    w2_p = jnp.pad(w2, ((0, dp), (0, dp)))
    w3_p = jnp.pad(w3, ((0, dp), (0, dp)))
    b1_p = jnp.pad(b1, ((0, 0), (0, dp)))
    b2_p = jnp.pad(b2, ((0, 0), (0, dp)))
    b3_p = jnp.pad(b3, ((0, 0), (0, dp)))

    cost = pl.CostEstimate(
        flops=2 * B * Dp * Dp + 2 * 2 * (B * Tp) * Dp * Dp,
        transcendentals=2 * B * Tp * Dp + B * Tp,
        bytes_accessed=4 * (B * N * Dp + Tp * Dp + 3 * Dp * Dp + 3 * Dp
                            + B * Tp * Dp),
    )

    # Single invocation (no grid): every operand fits trivially in VMEM (~0.25 MiB),
    # all B batches and the 3 matmuls are processed in one step, so there is no
    # per-grid-step loop overhead and the output store is a full-width 128-lane vst.
    out_p = pl.pallas_call(
        functools.partial(cpa_kernel, d_valid=D),
        out_shape=jax.ShapeDtypeStruct((B, Tp, Dp), jnp.float32),
        cost_estimate=cost,
    )(feat_p, pos_p, w1_p, b1_p, w2_p, b2_p, w3_p, b3_p)

    return out_p[:, :T, :D]


def cpa_reference(feat, pos_embed, w1, b1, w2, b2, w3, b3):
    """Pure-JAX reference mirroring the PyTorch module."""
    fm = jnp.mean(feat, axis=1, keepdims=True)                 # (B, 1, D)
    x = fm @ w1 + b1 + pos_embed                               # (B, T, D)
    y = jnp.tanh(x) @ w2 + b2
    p = jax.nn.softmax(y, axis=-1)
    return (fm * p) @ w3 + b3


if __name__ == "__main__":
    # Small shapes consistent with the module.
    B, N, D = 2, 8, 32
    MAX_LEN = 25
    T = MAX_LEN + 1

    key = jax.random.PRNGKey(0)
    k_feat, k_w1, k_b1, k_w2, k_b2, k_w3, k_b3, k_pos = jax.random.split(key, 8)

    feat = jax.random.normal(k_feat, (B, N, D), dtype=jnp.float32)

    # Deterministic synthetic parameters (weights stored as [in, out] = W^T).
    scale = 1.0 / jnp.sqrt(D)
    w1 = jax.random.uniform(k_w1, (D, D), jnp.float32, -scale, scale)
    b1 = jax.random.uniform(k_b1, (1, D), jnp.float32, -scale, scale)
    w2 = jax.random.uniform(k_w2, (D, D), jnp.float32, -scale, scale)
    b2 = jax.random.uniform(k_b2, (1, D), jnp.float32, -scale, scale)
    w3 = jax.random.uniform(k_w3, (D, D), jnp.float32, -scale, scale)
    b3 = jax.random.uniform(k_b3, (1, D), jnp.float32, -scale, scale)
    # pos_embed ~ trunc_normal(std=0.02); plain normal*0.02 is a fine synthetic stand-in.
    pos_embed = 0.02 * jax.random.normal(k_pos, (1, T, D), dtype=jnp.float32)

    out = cpa_forward(feat, pos_embed, w1, b1, w2, b2, w3, b3)
    out = jax.block_until_ready(out)

    ref = cpa_reference(feat, pos_embed, w1, b1, w2, b2, w3, b3)
    assert out.shape == (B, T, D)
    # Tolerance loosened slightly for the EUP approx reciprocal in the softmax.
    assert jnp.allclose(out, ref, atol=5e-3, rtol=5e-3), \
        f"max abs err {jnp.max(jnp.abs(out - ref))}"

    print("KERNEL_OK")
</pallas_src>

<mosaic_0001>
module attributes {stable_mosaic.version = 11 : i64} {
  func.func @cpa_kernel(%arg0: memref<2x8x128xf32, #tpu.memory_space<vmem>>, %arg1: memref<1x32x128xf32, #tpu.memory_space<vmem>>, %arg2: memref<128x128xf32, #tpu.memory_space<vmem>>, %arg3: memref<1x128xf32, #tpu.memory_space<vmem>>, %arg4: memref<128x128xf32, #tpu.memory_space<vmem>>, %arg5: memref<1x128xf32, #tpu.memory_space<vmem>>, %arg6: memref<128x128xf32, #tpu.memory_space<vmem>>, %arg7: memref<1x128xf32, #tpu.memory_space<vmem>>, %arg8: memref<2x32x128xf32, #tpu.memory_space<vmem>>) attributes {dimension_semantics = [], scalar_prefetch = 0 : i64, scratch_operands = 0 : i64, tpu.core_type = #tpu.core_type<tc>} {
    %c0 = arith.constant 0 : index
    %c0_0 = arith.constant 0 : index
    %c0_1 = arith.constant 0 : index
    %0 = vector.load %arg0[%c0, %c0_0, %c0_1] : memref<2x8x128xf32, #tpu.memory_space<vmem>>, vector<2x8x128xf32>
    %cst = arith.constant dense<0.000000e+00> : vector<2x128xf32>
    %1 = vector.multi_reduction <add>, %0, %cst [1] : vector<2x8x128xf32> to vector<2x128xf32>
    %cst_2 = arith.constant 1.250000e-01 : f32
    %2 = vector.broadcast %cst_2 : f32 to vector<2x128xf32>
    %3 = arith.mulf %1, %2 : vector<2x128xf32>
    %c0_3 = arith.constant 0 : index
    %c0_4 = arith.constant 0 : index
    %4 = vector.load %arg2[%c0_3, %c0_4] : memref<128x128xf32, #tpu.memory_space<vmem>>, vector<128x128xf32>
    %cst_5 = arith.constant dense<0.000000e+00> : vector<2x128xf32>
    %5 = tpu.matmul %3, %4, %cst_5 {dimension_numbers = #tpu.dot_dimension_numbers<[1], [0], [0], [1], [0, 0, 1, 1], [], []>} : vector<2x128xf32>, vector<128x128xf32>, vector<2x128xf32> -> vector<2x128xf32>
    %c0_6 = arith.constant 0 : index
    %c0_7 = arith.constant 0 : index
    %6 = vector.load %arg3[%c0_6, %c0_7] : memref<1x128xf32, #tpu.memory_space<vmem>>, vector<1x128xf32>
    %7 = vector.broadcast %6 : vector<1x128xf32> to vector<2x128xf32>
    %8 = arith.addf %5, %7 : vector<2x128xf32>
    %9 = vector.shape_cast %8 : vector<2x128xf32> to vector<2x1x128xf32>
    %c0_8 = arith.constant 0 : index
    %c0_9 = arith.constant 0 : index
    %c0_10 = arith.constant 0 : index
    %10 = vector.load %arg1[%c0_8, %c0_9, %c0_10] : memref<1x32x128xf32, #tpu.memory_space<vmem>>, vector<1x32x128xf32>
    %11 = vector.broadcast %9 : vector<2x1x128xf32> to vector<2x32x128xf32>
    %12 = vector.broadcast %10 : vector<1x32x128xf32> to vector<2x32x128xf32>
    %13 = arith.addf %11, %12 : vector<2x32x128xf32>
    %14 = vector.shape_cast %13 : vector<2x32x128xf32> to vector<64x128xf32>
    %15 = math.tanh %14 : vector<64x128xf32>
    %c0_11 = arith.constant 0 : index
    %c0_12 = arith.constant 0 : index
    %16 = vector.load %arg4[%c0_11, %c0_12] : memref<128x128xf32, #tpu.memory_space<vmem>>, vector<128x128xf32>
    %cst_13 = arith.constant dense<0.000000e+00> : vector<64x128xf32>
    %17 = tpu.matmul %15, %16, %cst_13 {dimension_numbers = #tpu.dot_dimension_numbers<[1], [0], [0], [1], [0, 0, 1, 1], [], []>} : vector<64x128xf32>, vector<128x128xf32>, vector<64x128xf32> -> vector<64x128xf32>
    %c0_14 = arith.constant 0 : index
    %c0_15 = arith.constant 0 : index
    %18 = vector.load %arg5[%c0_14, %c0_15] : memref<1x128xf32, #tpu.memory_space<vmem>>, vector<1x128xf32>
    %19 = vector.broadcast %18 : vector<1x128xf32> to vector<64x128xf32>
    %20 = arith.addf %17, %19 : vector<64x128xf32>
    %21 = tpu.iota {dimensions = array<i32: 1>} : vector<64x128xi32>
    %c32_i32 = arith.constant 32 : i32
    %22 = vector.broadcast %c32_i32 : i32 to vector<64x128xi32>
    %23 = arith.cmpi slt, %21, %22 : vector<64x128xi32>
    %cst_16 = arith.constant -1.000000e+30 : f32
    %24 = vector.broadcast %cst_16 : f32 to vector<64x128xf32>
    %25 = arith.select %23, %20, %24 : vector<64x128xi1>, vector<64x128xf32>
    %cst_17 = arith.constant dense<0xFF800000> : vector<64xf32>
    %26 = vector.multi_reduction <maximumf>, %25, %cst_17 [1] : vector<64x128xf32> to vector<64xf32>
    %27 = vector.shape_cast %26 : vector<64xf32> to vector<64x1xf32>
    %28 = vector.broadcast %27 : vector<64x1xf32> to vector<64x128xf32>
    %29 = arith.subf %25, %28 : vector<64x128xf32>
    %30 = math.exp %29 : vector<64x128xf32>
    %cst_18 = arith.constant dense<0.000000e+00> : vector<64xf32>
    %31 = vector.multi_reduction <add>, %30, %cst_18 [1] : vector<64x128xf32> to vector<64xf32>
    %32 = vector.shape_cast %31 : vector<64xf32> to vector<64x1xf32>
    %33 = tpu.reciprocal %32 {approx = true} : vector<64x1xf32> -> vector<64x1xf32>
    %34 = vector.broadcast %33 : vector<64x1xf32> to vector<64x128xf32>
    %35 = arith.mulf %30, %34 : vector<64x128xf32>
    %36 = vector.shape_cast %3 : vector<2x128xf32> to vector<2x1x128xf32>
    %37 = vector.shape_cast %36 : vector<2x1x128xf32> to vector<2x1x128xf32>
    %38 = vector.broadcast %37 : vector<2x1x128xf32> to vector<2x32x128xf32>
    %39 = vector.shape_cast %38 : vector<2x32x128xf32> to vector<64x128xf32>
    %40 = arith.mulf %39, %35 : vector<64x128xf32>
    %c0_19 = arith.constant 0 : index
    %c0_20 = arith.constant 0 : index
    %41 = vector.load %arg6[%c0_19, %c0_20] : memref<128x128xf32, #tpu.memory_space<vmem>>, vector<128x128xf32>
    %cst_21 = arith.constant dense<0.000000e+00> : vector<64x128xf32>
    %42 = tpu.matmul %40, %41, %cst_21 {dimension_numbers = #tpu.dot_dimension_numbers<[1], [0], [0], [1], [0, 0, 1, 1], [], []>} : vector<64x128xf32>, vector<128x128xf32>, vector<64x128xf32> -> vector<64x128xf32>
    %c0_22 = arith.constant 0 : index
    %c0_23 = arith.constant 0 : index
    %43 = vector.load %arg7[%c0_22, %c0_23] : memref<1x128xf32, #tpu.memory_space<vmem>>, vector<1x128xf32>
    %44 = vector.broadcast %43 : vector<1x128xf32> to vector<64x128xf32>
    %45 = arith.addf %42, %44 : vector<64x128xf32>
    %46 = vector.shape_cast %45 : vector<64x128xf32> to vector<2x32x128xf32>
    %c0_24 = arith.constant 0 : index
    %c0_25 = arith.constant 0 : index
    %c0_26 = arith.constant 0 : index
    %47 = vector.load %arg8[%c0_24, %c0_25, %c0_26] : memref<2x32x128xf32, #tpu.memory_space<vmem>>, vector<2x32x128xf32>
    tpu.vector_store %arg8[%c0_24, %c0_25, %c0_26], %46 {strides = array<i32>} : memref<2x32x128xf32, #tpu.memory_space<vmem>>, vector<2x32x128xf32>,
    return
  }
}

</mosaic_0001>

<bundles_post_ra>
// kernel: tpu_custom_call.1
= control target key start
LH: loop header
LB: loop body
LE: loop exit
PB: predicated region body
PF: predicated region fallthrough
CT: control target
= control target key end

     0   :  { %13 = vsyncpa [#allocation3], 0  ;;  %s1370_s0 = inlined_call_operand.hbm [shape: f32[2,8,128], index: 0, kind: input, shape index: {}]   ;;  %s1371_s1 = inlined_call_operand.hbm [shape: f32[1,32,128], index: 1, kind: input, shape index: {}]   ;;  %s1372_s2 = inlined_call_operand.hbm [shape: f32[128,128], index: 2, kind: input, shape index: {}]   ;;  %s1373_s3 = inlined_call_operand.vmem [shape: f32[1,128], index: 3, kind: input, shape index: {}]   ;;  %s1374_s4 = inlined_call_operand.hbm [shape: f32[128,128], index: 4, kind: input, shape index: {}]   ;;  %s1375_s5 = inlined_call_operand.vmem [shape: f32[1,128], index: 5, kind: input, shape index: {}]   ;;  %s1376_s6 = inlined_call_operand.hbm [shape: f32[128,128], index: 6, kind: input, shape index: {}]   ;;  %s1377_s7 = inlined_call_operand.vmem [shape: f32[1,128], index: 7, kind: input, shape index: {}]   ;;  %s1378_s8 = inlined_call_operand.hbm [shape: f32[2,32,128], index: 8, kind: output, shape index: {}]  }
   0x1   :  { %14 = vsyncpa [#allocation6], 0 }
   0x2   :  { %15 = vsyncpa [#allocation9], 0 }
   0x3   :  { %16 = vsyncpa [#allocation4], 0  ;;  %s1134_s27 = smov [#allocation5]   ;;  %s1135_s29 = smov [#allocation8]  }
   0x4   :  { %s34_s28 = sshll.u32 %s1134_s27, 4  ;;  %s60_s30 = sshll.u32 %s1135_s29, 4  ;;  %s35_s28 = int_to_ptr.vmem [resolvable:$true] %s34_s28  ;;  %s1191_s30 = int_to_ptr.vmem [resolvable:$true] %s60_s30 }
   0x5   :  { %s994_s11 = scalar_lea.hbm %s1371_s1, 512 }
   0x6   :  { %p995_p0 = scmp.ne.s32.totalorder %s1371_s1, %s994_s11  ;;  %p998_p1 = scmp.lt.u32.totalorder %s994_s11, %s1371_s1 }
   0x8   :  { %p1000_p2 = pnand %p998_p1, %p995_p0 }
   0xa   :  { %1003 = shalt.err (!%p1000_p2)
}
   0xb   :  { %s1004_s16 = scalar_lea.vmem %s35_s28, 512  ;;  %p1009_p4 = scmp.lt.s32.totalorder %s35_s28, %s35_s28 }
   0xc   :  { %p1005_p3 = scmp.ne.s32.totalorder %s35_s28, %s1004_s16  ;;  %p1010_p5 = scmp.lt.s32.totalorder %s1004_s16, %s1004_s16 }
   0xe   :  { %p1011_p6 = por %p1010_p5, %p1009_p4 }
  0x10   :  { %p1012_p7 = pnand %p1011_p6, %p1005_p3 }
  0x12   :  { %1015 = shalt.err (!%p1012_p7)
}
  0x13   :  { %s1136_s17 = smov 128   ;;  %s1137_s18 = smov 8  }
  0x14   :  { %40 = dma.hbm_to_vmem [thread:$0]  %s1371_s1, 512, %s35_s28, [#allocation6], %s1136_s17, %s1136_s17, %s1137_s18  }
  0x15   :  { %s1016_s23 = scalar_lea.hbm %s1374_s4, 2048 }
  0x16   :  { %p1017_p8 = scmp.ne.s32.totalorder %s1374_s4, %s1016_s23  ;;  %p1020_p9 = scmp.lt.u32.totalorder %s1016_s23, %s1374_s4 }
  0x18   :  { %p1022_p10 = pnand %p1020_p9, %p1017_p8 }
  0x1a   :  { %1025 = shalt.err (!%p1022_p10)
}
  0x1b   :  { %s1026_s29 = scalar_lea.vmem %s1191_s30, 2048  ;;  %p1031_p12 = scmp.lt.s32.totalorder %s1191_s30, %s1191_s30 }
  0x1c   :  { %p1027_p11 = scmp.ne.s32.totalorder %s1191_s30, %s1026_s29  ;;  %p1032_p13 = scmp.lt.s32.totalorder %s1026_s29, %s1026_s29 }
  0x1e   :  { %p1033_p0 = por %p1032_p13, %p1031_p12 }
  0x20   :  { %p1034_p1 = pnand %p1033_p0, %p1027_p11 }
  0x22   :  { %1037 = shalt.err (!%p1034_p1)
}
  0x23   :  { %66 = dma.hbm_to_vmem [thread:$0]  %s1374_s4, 2048, %s1191_s30, [#allocation9], %s1136_s17, %s1136_s17, %s1137_s18  }
  0x24   :  { %s1138_s9 = smov [#allocation2]   ;;  %s1139_s11 = smov [#allocation7]  }
  0x25   :  { %s22_s10 = sshll.u32 %s1138_s9, 4  ;;  %s46_s12 = sshll.u32 %s1139_s11, 4  ;;  %s23_s10 = int_to_ptr.vmem [resolvable:$true] %s22_s10  ;;  %s1228_s12 = int_to_ptr.vmem [resolvable:$true] %s46_s12 }
  0x26   :  { %s1038_s15 = scalar_lea.hbm %s1370_s0, 256 }
  0x27   :  { %p1039_p2 = scmp.ne.s32.totalorder %s1370_s0, %s1038_s15  ;;  %p1042_p3 = scmp.lt.u32.totalorder %s1038_s15, %s1370_s0 }
  0x29   :  { %p1044_p4 = pnand %p1042_p3, %p1039_p2 }
  0x2b   :  { %1047 = shalt.err (!%p1044_p4)
}
  0x2c   :  { %s1048_s4 = scalar_lea.vmem %s23_s10, 256  ;;  %p1053_p6 = scmp.lt.s32.totalorder %s23_s10, %s23_s10 }
  0x2d   :  { %p1049_p5 = scmp.ne.s32.totalorder %s23_s10, %s1048_s4  ;;  %p1054_p7 = scmp.lt.s32.totalorder %s1048_s4, %s1048_s4 }
  0x2f   :  { %p1055_p8 = por %p1054_p7, %p1053_p6 }
  0x31   :  { %p1056_p9 = pnand %p1055_p8, %p1049_p5 }
  0x33   :  { %1059 = shalt.err (!%p1056_p9)
}
  0x34   :  { %28 = dma.hbm_to_vmem [thread:$0]  %s1370_s0, 256, %s23_s10, [#allocation3], %s1136_s17, %s1136_s17, %s1137_s18  }
  0x35   :  { %s1060_s25 = scalar_lea.hbm %s1372_s2, 2048 }
  0x36   :  { %p1061_p10 = scmp.ne.s32.totalorder %s1372_s2, %s1060_s25  ;;  %p1064_p11 = scmp.lt.u32.totalorder %s1060_s25, %s1372_s2 }
  0x38   :  { %p1066_p12 = pnand %p1064_p11, %p1061_p10 }
  0x3a   :  { %1069 = shalt.err (!%p1066_p12)
}
  0x3b   :  { %s1070_s28 = scalar_lea.vmem %s1228_s12, 2048  ;;  %p1075_p0 = scmp.lt.s32.totalorder %s1228_s12, %s1228_s12 }
  0x3c   :  { %p1071_p13 = scmp.ne.s32.totalorder %s1228_s12, %s1070_s28  ;;  %p1076_p1 = scmp.lt.s32.totalorder %s1070_s28, %s1070_s28 }
  0x3e   :  { %p1077_p2 = por %p1076_p1, %p1075_p0 }
  0x40   :  { %p1078_p3 = pnand %p1077_p2, %p1071_p13 }
  0x42   :  { %1081 = shalt.err (!%p1078_p3)
}
  0x43   :  { %52 = dma.hbm_to_vmem [thread:$0]  %s1372_s2, 2048, %s1228_s12, [#allocation6], %s1136_s17, %s1136_s17, %s1137_s18  }
  0x44   :  { %s1140_s10 = smov [#allocation10]   ;;  %s1082_s15 = scalar_lea.hbm %s1376_s6, 2048 }
  0x45   :  { %s74_s11 = sshll.u32 %s1140_s10, 4  ;;  %p1083_p4 = scmp.ne.s32.totalorder %s1376_s6, %s1082_s15  ;;  %s75_s11 = int_to_ptr.vmem [resolvable:$true] %s74_s11 }
  0x46   :  { %p1086_p5 = scmp.lt.u32.totalorder %s1082_s15, %s1376_s6 }
  0x48   :  { %p1088_p6 = pnand %p1086_p5, %p1083_p4 }
  0x4a   :  { %1091 = shalt.err (!%p1088_p6)
}
  0x4b   :  { %s1092_s4 = scalar_lea.vmem %s75_s11, 2048  ;;  %p1097_p8 = scmp.lt.s32.totalorder %s75_s11, %s75_s11 }
  0x4c   :  { %p1093_p7 = scmp.ne.s32.totalorder %s75_s11, %s1092_s4  ;;  %p1098_p9 = scmp.lt.s32.totalorder %s1092_s4, %s1092_s4 }
  0x4e   :  { %p1099_p10 = por %p1098_p9, %p1097_p8 }
  0x50   :  { %p1100_p11 = pnand %p1099_p10, %p1093_p7 }
  0x52   :  { %1103 = shalt.err (!%p1100_p11)
}
  0x53   :  { %80 = dma.hbm_to_vmem [thread:$0]  %s1376_s6, 2048, %s75_s11, [#allocation9], %s1136_s17, %s1136_s17, %s1137_s18  }
  0x54   :  { %1126 = dma.done.wait [#allocation3], 256  }
  0x55   :  { %1127 = vsyncadd [#allocation3], 4294967040 }
  0x56   :  { %1128 = dma.done.wait [#allocation6], 2560  }
  0x57   :  { %1129 = vsyncadd [#allocation6], 4294964736 }
  0x58   :  { %1130 = dma.done.wait [#allocation9], 4096  }
  0x59   :  { %1131 = vsyncadd [#allocation9], 4294963200  ;;  %v1141_v0 = vmov 0.0|0.0   ;;  %vm1142_vm0 = vmmov 0   ;;  %v1143_v1 = vmov 0.0   ;;  %v114_v2 = vld [vmem:[#allocation7] sm:$0xff] }
  0x5a   :  { %830 = vmatprep.subr.bf16.mxu0 %v1141_v0  ;;  %739 = vmatprep.mubr.msk.f32.mxu0 %vm1142_vm0, %v1143_v1  ;;  %v115_v3 = vld [vmem:[#allocation7 + $0x8] sm:$0xff]  ;;  %v116_v4 = vld [vmem:[#allocation7 + $0x10] sm:$0xff]  ;;  %v117_v6 = vld [vmem:[#allocation7 + $0x18] sm:$0xff]  ;;  %vm139_vm1 = vcmask 1041409   ;;  %s1145_s24 = smov [#allocation11]  }
  0x5b   :  { %v831_v5 = vpack.c.bf16 %v115_v3, %v114_v2  ;;  %v834_v7 = vpack.c.bf16 %v117_v6, %v116_v4  ;;  %v118_v8 = vld [vmem:[#allocation7 + $0x20] sm:$0xff]  ;;  %v119_v9 = vld [vmem:[#allocation7 + $0x28] sm:$0xff]  ;;  %v98_v10 = vld [vmem:[#allocation2] sm:$0xff]  ;;  %v1144_v3 = vmov 1966171168   ;;  %s625_s25 = sshll.u32 %s1145_s24, 4  ;;  %s626_s25 = int_to_ptr.vmem [resolvable:$true] %s625_s25 }
  0x5c   :  { %v99_v11 = vld [vmem:[#allocation2 + $0x8] sm:$0xff]  ;;  %v100_v12 = vrot.slane %v98_v10, 4  ;;  %v265_v14 = vld [vmem:[#allocation8] sm:$0xff]  ;;  %v266_v15 = vld [vmem:[#allocation8 + $0x8] sm:$0xff]  ;;  %v837_v17 = vpack.c.bf16 %v119_v9, %v118_v8  ;;  %v214_v4 = vunpack.c.l.s4 %v1144_v3  ;;  %p1109_p13 = scmp.lt.s32.totalorder %s626_s25, %s626_s25 }
  0x5d   :  { %832 = vmatpush3.bf16.msra.mxu0 %v831_v5  ;;  %v106_v13 = vrot.slane %v99_v11, 4  ;;  %v267_v16 = vld [vmem:[#allocation8 + $0x10] sm:$0xff]  ;;  %v854_v19 = vpack.c.bf16 %v266_v15, %v265_v14  ;;  %v268_v20 = vld [vmem:[#allocation8 + $0x18] sm:$0xff]  ;;  %v269_v25 = vld [vmem:[#allocation8 + $0x20] sm:$0xff]  ;;  %v216_v5 = vlaneseq }
  0x5e   :  { %833 = vmatprep.subr.bf16.mxu0 %v1141_v0  ;;  %v120_v18 = vld [vmem:[#allocation7 + $0x30] sm:$0xff]  ;;  %v121_v21 = vld [vmem:[#allocation7 + $0x38] sm:$0xff]  ;;  %v101_v22 = vadd.f32 %v100_v12, %v98_v10  ;;  %v858_v24 = vpack.c.bf16 %v268_v20, %v267_v16  ;;  %v270_v26 = vld [vmem:[#allocation8 + $0x28] sm:$0xff]  ;;  %v215_v6 = vunpack.c.0.s8 %v214_v4 }
  0x5f   :  { %v107_v23 = vadd.f32 %v106_v13, %v99_v11  ;;  %855 = vmatprep.subr.bf16.mxu1 %v854_v19  ;;  %v840_v27 = vpack.c.bf16 %v121_v21, %v120_v18  ;;  %v862_v30 = vpack.c.bf16 %v270_v26, %v269_v25  ;;  %v122_v31 = vld [vmem:[#allocation7 + $0x40] sm:$0xff]  ;;  %v123_v32 = vld [vmem:[#allocation7 + $0x48] sm:$0xff]  ;;  %v124_v36 = vld [vmem:[#allocation7 + $0x50] sm:$0xff] }
  0x60   :  { %857 = vmatpush3.bf16.msra.mxu1 %v854_v19  ;;  %v102_v28 = vrot.slane %v101_v22, 2  ;;  %v843_v33 = vpack.c.bf16 %v123_v32, %v122_v31  ;;  %v125_v37 = vld [vmem:[#allocation7 + $0x58] sm:$0xff]  ;;  %v126_v41 = vld [vmem:[#allocation7 + $0x60] sm:$0xff]  ;;  %v127_v42 = vld [vmem:[#allocation7 + $0x68] sm:$0xff] }
  0x61   :  { %835 = vmatpush3.bf16.msra.mxu0 %v834_v7  ;;  %v108_v29 = vrot.slane %v107_v23, 2  ;;  %859 = vmatprep.subr.bf16.mxu1 %v858_v24  ;;  %v846_v38 = vpack.c.bf16 %v125_v37, %v124_v36  ;;  %v849_v43 = vpack.c.bf16 %v127_v42, %v126_v41  ;;  %v128_v46 = vld [vmem:[#allocation7 + $0x70] sm:$0xff]  ;;  %v129_v47 = vld [vmem:[#allocation7 + $0x78] sm:$0xff]  ;;  %v273_v55 = vld [vmem:[#allocation8 + $0x40] sm:$0xff]  ;;  %v217_v7 = vshrl.u32 %v216_v5, 7 }
  0x62   :  { %836 = vmatprep.subr.bf16.mxu0 %v1141_v0  ;;  %v103_v34 = vadd.f32 %v102_v28, %v101_v22  ;;  %v852_v48 = vpack.c.bf16 %v129_v47, %v128_v46  ;;  %v271_v52 = vld [vmem:[#allocation8 + $0x30] sm:$0xff]  ;;  %v272_v53 = vld [vmem:[#allocation8 + $0x38] sm:$0xff]  ;;  %v274_v56 = vld [vmem:[#allocation8 + $0x48] sm:$0xff] }
  0x63   :  { %v109_v35 = vadd.f32 %v108_v29, %v107_v23  ;;  %v866_v54 = vpack.c.bf16 %v272_v53, %v271_v52  ;;  %v870_v57 = vpack.c.bf16 %v274_v56, %v273_v55  ;;  %v275_v58 = vld [vmem:[#allocation8 + $0x50] sm:$0xff]  ;;  %v276_v59 = vld [vmem:[#allocation8 + $0x58] sm:$0xff]  ;;  %v277_v61 = vld [vmem:[#allocation8 + $0x60] sm:$0xff]  ;;  %v218_v9 = vsub.s32 %v215_v6, %v217_v7 }
  0x64   :  { %861 = vmatpush3.bf16.msra.mxu1 %v858_v24  ;;  %v104_v39 = vrot.slane %v103_v34, 1  ;;  %v874_v60 = vpack.c.bf16 %v276_v59, %v275_v58  ;;  %v278_v62 = vld [vmem:[#allocation8 + $0x68] sm:$0xff]  ;;  %v280_v1 = vld [vmem:[#allocation8 + $0x78] sm:$0xff]  ;;  %v639_v8 = vld [vmem:[%s1373_s3] ss:$0 sm:$0xff]  ;;  %v241_v14 = vsub.s32 0, %v217_v7 }
  0x65   :  { %838 = vmatpush3.bf16.msra.mxu0 %v837_v17  ;;  %863 = vmatprep.subr.bf16.mxu1 %v862_v30  ;;  %v110_v40 = vrot.slane %v109_v35, 1  ;;  %v878_v63 = vpack.c.bf16 %v278_v62, %v277_v61  ;;  %v236_v18 = vld [vmem:[#allocation5 + $0x8] sm:$0xff]  ;;  %v235_v19 = vld [vmem:[#allocation5] sm:$0xff]  ;;  %v237_v21 = vld [vmem:[#allocation5 + $0x10] sm:$0xff] }
  0x66   :  { %839 = vmatprep.subr.bf16.mxu0 %v1141_v0  ;;  %v105_v44 = vadd.f32 %v104_v39, %v103_v34  ;;  %v238_v24 = vld [vmem:[#allocation5 + $0x18] sm:$0xff]  ;;  %v640_v41 = vld [vmem:[%s1375_s5] ss:$0 sm:$0xff]  ;;  %v484_v4 = vld [vmem:[#allocation10] sm:$0xff] }
  0x67   :  { %v111_v45 = vadd.f32 %v110_v40, %v109_v35  ;;  %v394_v40 = vand.u32 127, %v216_v5  ;;  %v485_v5 = vld [vmem:[#allocation10 + $0x8] sm:$0xff]  ;;  %v486_v6 = vld [vmem:[#allocation10 + $0x10] sm:$0xff] }
  0x68   :  { %865 = vmatpush3.bf16.msra.mxu1 %v862_v30  ;;  %v1287_v49 = vmul.f32 0.125, %v105_v44  ;;  %v886_v7 = vpack.c.bf16 %v485_v5, %v484_v4 }
  0x69   :  { %841 = vmatpush3.bf16.msra.mxu0 %v840_v27  ;;  %v1289_v50 = vmul.f32 0.125, %v111_v45  ;;  %867 = vmatprep.subr.bf16.mxu1 %v866_v54  ;;  %vm395_vm2 = vcmp.lt.s32.totalorder %v394_v40, 32 }
  0x6a   :  { %842 = vmatprep.subr.bf16.mxu0 %v1141_v0 }
  0x6b   :  { %v140_v51 = vsel %vm139_vm1, %v1289_v50, %v1287_v49 }
  0x6c   :  { %869 = vmatpush3.bf16.msra.mxu1 %v866_v54 }
  0x6d   :  { %844 = vmatpush3.bf16.msra.mxu0 %v843_v33  ;;  %871 = vmatprep.subr.bf16.mxu1 %v870_v57 }
  0x6e   :  { %845 = vmatprep.subr.bf16.mxu0 %v1141_v0 }
  0x70   :  { %873 = vmatpush3.bf16.msra.mxu1 %v870_v57 }
  0x71   :  { %847 = vmatpush3.bf16.msra.mxu0 %v846_v38  ;;  %875 = vmatprep.subr.bf16.mxu1 %v874_v60 }
  0x72   :  { %848 = vmatprep.subr.bf16.mxu0 %v1141_v0 }
  0x74   :  { %877 = vmatpush3.bf16.msra.mxu1 %v874_v60 }
  0x75   :  { %850 = vmatpush3.bf16.msra.mxu0 %v849_v43  ;;  %879 = vmatprep.subr.bf16.mxu1 %v878_v63 }
  0x76   :  { %851 = vmatprep.subr.bf16.mxu0 %v1141_v0  ;;  %v279_v0 = vld [vmem:[#allocation8 + $0x70] sm:$0xff] }
  0x77   :  { %v882_v2 = vpack.c.bf16 %v280_v1, %v279_v0 }
  0x78   :  { %881 = vmatpush3.bf16.msra.mxu1 %v878_v63 }
  0x79   :  { %853 = vmatpush3.bf16.msra.mxu0 %v852_v48  ;;  %883 = vmatprep.subr.bf16.mxu1 %v882_v2 }
  0x7a   :  { %887 = vmatprep.subr.bf16.mxu0 %v886_v7 }
  0x7c   :  { %740 = vmatmul.mubr.f32.vlgmr.msra.gmra.mrb[0].mxu0 %v140_v51  ;;  %885 = vmatpush3.bf16.msra.mxu1 %v882_v2 }
  0x7d   :  { %918 = vmatprep.subr.bf16.mxu1 %v886_v7  ;;  %889 = vmatpush3.bf16.msra.mxu0 %v886_v7 }
 0x14f   :  { %v208_v10 = vpop.f32.mrb[0].mxu0 }
 0x150   :  { %v209_v11 = vadd.f32 %v639_v8, %v208_v10  ;;  %v741_v12 = vpop.f32.mrb[1].mxu0  ;;  %v487_v8 = vld [vmem:[#allocation10 + $0x18] sm:$0xff]  ;;  %v488_v10 = vld [vmem:[#allocation10 + $0x20] sm:$0xff] }
 0x152   :  { %v219_v13 = vrot.slane %v209_v11, %v218_v9  ;;  %v489_v11 = vld [vmem:[#allocation10 + $0x28] sm:$0xff] }
 0x153   :  { %v894_v12 = vpack.c.bf16 %v489_v11, %v488_v10 }
 0x154   :  { %v227_v15 = vrot.slane %v219_v13, %v218_v9  ;;  %v220_v16 = vcombine.high %v219_v13, %v219_v13 }
 0x156   :  { %v242_v17 = vrot.slane %v227_v15, %v241_v14  ;;  %v234_v20 = vrot.slane %v220_v16, %v218_v9  ;;  %v890_v9 = vpack.c.bf16 %v487_v8, %v486_v6 }
 0x158   :  { %v250_v22 = vadd.f32 %v242_v17, %v236_v18  ;;  %v249_v23 = vadd.f32 %v242_v17, %v235_v19  ;;  %v246_v25 = vrot.slane %v234_v20, %v241_v14  ;;  %v251_v26 = vadd.f32 %v242_v17, %v237_v21  ;;  %891 = vmatprep.subr.bf16.mxu0 %v890_v9 }
 0x159   :  { %v252_v27 = vadd.f32 %v242_v17, %v238_v24  ;;  %893 = vmatpush3.bf16.msra.mxu0 %v890_v9 }
 0x15a   :  { %946 = vtanh.f32 %v250_v22  ;;  %v253_v28 = vadd.f32 %v246_v25, %v235_v19  ;;  %v254_v29 = vadd.f32 %v246_v25, %v236_v18  ;;  %v255_v30 = vadd.f32 %v246_v25, %v237_v21  ;;  %895 = vmatprep.subr.bf16.mxu0 %v894_v12 }
 0x15b   :  { %948 = vtanh.f32 %v249_v23  ;;  %v256_v32 = vadd.f32 %v246_v25, %v238_v24 }
 0x15c   :  { %950 = vtanh.f32 %v251_v26 }
 0x15d   :  { %952 = vtanh.f32 %v252_v27  ;;  %897 = vmatpush3.bf16.msra.mxu0 %v894_v12 }
 0x15e   :  { %954 = vtanh.f32 %v253_v28 }
 0x15f   :  { %956 = vtanh.f32 %v254_v29 }
 0x160   :  { %958 = vtanh.f32 %v255_v30 }
 0x161   :  { %960 = vtanh.f32 %v256_v32 }
 0x164   :  { %v947_v31 = vpop.eup %946 }
 0x165   :  { %v949_v33 = vpop.eup %948 }
 0x166   :  { %774 = vmatprep.mubr.f32.mxu1 %v949_v33  ;;  %v951_v34 = vpop.eup %950 }
 0x167   :  { %775 = vmatmul.mubr.f32.vlgmr.msra.gmra.mrb[0].mxu1 %v947_v31  ;;  %v953_v35 = vpop.eup %952 }
 0x168   :  { %777 = vmatprep.mubr.f32.mxu1 %v951_v34  ;;  %v955_v36 = vpop.eup %954  ;;  %926 = vmatpush3.bf16.msra.mxu1 %v886_v7 }
 0x169   :  { %v957_v37 = vpop.eup %956  ;;  %919 = vmatprep.subr.bf16.mxu1 %v890_v9 }
 0x16a   :  { %v959_v38 = vpop.eup %958 }
 0x16b   :  { %778 = vmatmul.mubr.f32.gmra.mrb[2].mxu1 %v953_v35  ;;  %v961_v39 = vpop.eup %960 }
 0x16c   :  { %780 = vmatprep.mubr.f32.mxu1 %v955_v36  ;;  %927 = vmatpush3.bf16.msra.mxu1 %v890_v9 }
 0x16d   :  { %920 = vmatprep.subr.bf16.mxu1 %v894_v12 }
 0x16f   :  { %781 = vmatmul.mubr.f32.gmra.mrb[4].mxu1 %v957_v37 }
 0x170   :  { %783 = vmatprep.mubr.f32.mxu1 %v959_v38  ;;  %928 = vmatpush3.bf16.msra.mxu1 %v894_v12 }
 0x173   :  { %784 = vmatmul.mubr.f32.gmra.mrb[6].mxu1 %v961_v39 }
 0x23a   :  { %v776_v42 = vpop.f32.mrb[0].mxu1 }
 0x23b   :  { %v360_v43 = vadd.f32 %v776_v42, %v640_v41  ;;  %v354_v44 = vpop.f32.mrb[1].mxu1  ;;  %v491_v42 = vld [vmem:[#allocation10 + $0x38] sm:$0xff] }
 0x23c   :  { %v355_v45 = vadd.f32 %v640_v41, %v354_v44 }
 0x23d   :  { %v397_v46 = vsel %vm395_vm2, %v360_v43, -1e+30 }
 0x23e   :  { %406 = vmax.xlane.f32.xlu1 %v397_v46  ;;  %v779_v47 = vpop.f32.mrb[2].mxu1  ;;  %v396_v48 = vsel %vm395_vm2, %v355_v45, -1e+30 }
 0x23f   :  { %v370_v51 = vadd.f32 %v779_v47, %v640_v41  ;;  %v364_v52 = vpop.f32.mrb[3].mxu1  ;;  %404 = vmax.xlane.f32.xlu0 %v396_v48  ;;  %v493_v47 = vld [vmem:[#allocation10 + $0x48] sm:$0xff] }
 0x240   :  { %v365_v53 = vadd.f32 %v640_v41, %v364_v52 }
 0x241   :  { %v1303_v54 = vsel %vm395_vm2, %v370_v51, -1e+30 }
 0x242   :  { %v782_v55 = vpop.f32.mrb[4].mxu1  ;;  %v398_v56 = vsel %vm395_vm2, %v365_v53, -1e+30  ;;  %v494_v53 = vld [vmem:[#allocation10 + $0x50] sm:$0xff] }
 0x243   :  { %v380_v57 = vadd.f32 %v782_v55, %v640_v41  ;;  %v374_v58 = vpop.f32.mrb[5].mxu1 }
 0x244   :  { %v375_v59 = vadd.f32 %v640_v41, %v374_v58 }
 0x245   :  { %v401_v60 = vsel %vm395_vm2, %v380_v57, -1e+30  ;;  %v497_v57 = vld [vmem:[#allocation10 + $0x68] sm:$0xff] }
 0x246   :  { %414 = vmax.xlane.f32.xlu1 %v401_v60  ;;  %v785_v61 = vpop.f32.mrb[6].mxu1  ;;  %v400_v62 = vsel %vm395_vm2, %v375_v59, -1e+30  ;;  %v498_v59 = vld [vmem:[#allocation10 + $0x70] sm:$0xff] }
 0x247   :  { %v390_v63 = vadd.f32 %v785_v61, %v640_v41  ;;  %v384_v0 = vpop.f32.mrb[7].mxu1  ;;  %412 = vmax.xlane.f32.xlu0 %v400_v62 }
 0x248   :  { %v385_v1 = vadd.f32 %v640_v41, %v384_v0  ;;  %v490_v41 = vld [vmem:[#allocation10 + $0x30] sm:$0xff] }
 0x249   :  { %v403_v2 = vsel %vm395_vm2, %v390_v63, -1e+30  ;;  %v898_v44 = vpack.c.bf16 %v491_v42, %v490_v41 }
 0x24a   :  { %v402_v3 = vsel %vm395_vm2, %v385_v1, -1e+30 }
 0x24b   :  { %416 = vmax.xlane.f32.xlu1 %v402_v3  ;;  %408 = vmax.xlane.f32.xlu0 %v398_v56 }
 0x24c   :  { %899 = vmatprep.subr.bf16.mxu0 %v898_v44  ;;  %921 = vmatprep.subr.bf16.mxu1 %v898_v44 }
 0x24d   :  { %901 = vmatpush3.bf16.msra.mxu0 %v898_v44  ;;  %929 = vmatpush3.bf16.msra.mxu1 %v898_v44 }
 0x24f   :  { %418 = vmax.xlane.f32.xlu1 %v403_v2  ;;  %410 = vmax.xlane.f32.xlu0 %v1303_v54 }
 0x2cb   :  { %v407_v13 = vpop.xlane.xlu1 %406 }
 0x2cc   :  { %v421_v14 = vsub.f32 %v397_v46, %v407_v13  ;;  %v405_v15 = vpop.xlane.xlu0 %404  ;;  %v492_v46 = vld [vmem:[#allocation10 + $0x40] sm:$0xff] }
 0x2cd   :  { %v420_v16 = vsub.f32 %v396_v48, %v405_v15  ;;  %v902_v51 = vpack.c.bf16 %v493_v47, %v492_v46 }
 0x2ce   :  { %v430_v17 = vmul.f32 1.442695, %v421_v14 }
 0x2cf   :  { %v428_v18 = vmul.f32 1.442695, %v420_v16  ;;  %903 = vmatprep.subr.bf16.mxu0 %v902_v51  ;;  %922 = vmatprep.subr.bf16.mxu1 %v902_v51 }
 0x2d0   :  { %962 = vpow2.f32 %v430_v17  ;;  %905 = vmatpush3.bf16.msra.mxu0 %v902_v51  ;;  %930 = vmatpush3.bf16.msra.mxu1 %v902_v51 }
 0x2d1   :  { %964 = vpow2.f32 %v428_v18 }
 0x2d3   :  { %v415_v19 = vpop.xlane.xlu1 %414 }
 0x2d4   :  { %v425_v20 = vsub.f32 %v401_v60, %v415_v19  ;;  %v413_v21 = vpop.xlane.xlu0 %412  ;;  %v499_v60 = vld [vmem:[#allocation10 + $0x78] sm:$0xff] }
 0x2d5   :  { %v424_v22 = vsub.f32 %v400_v62, %v413_v21  ;;  %v914_v61 = vpack.c.bf16 %v499_v60, %v498_v59 }
 0x2d6   :  { %v438_v23 = vmul.f32 1.442695, %v425_v20 }
 0x2d7   :  { %v436_v24 = vmul.f32 1.442695, %v424_v22 }
 0x2d8   :  { %966 = vpow2.f32 %v438_v23  ;;  %v417_v25 = vpop.xlane.xlu1 %416  ;;  %v409_v26 = vpop.xlane.xlu0 %408 }
 0x2d9   :  { %v426_v27 = vsub.f32 %v402_v3, %v417_v25  ;;  %v422_v28 = vsub.f32 %v398_v56, %v409_v26  ;;  %968 = vpow2.f32 %v436_v24  ;;  %v496_v56 = vld [vmem:[#allocation10 + $0x60] sm:$0xff] }
 0x2da   :  { %v1311_v29 = vpop.eup %962  ;;  %v910_v58 = vpack.c.bf16 %v497_v57, %v496_v56 }
 0x2db   :  { %v432_v30 = vmul.f32 1.442695, %v422_v28  ;;  %446 = vadd.xlane.f32.xlu0 %v1311_v29  ;;  %v440_v31 = vmul.f32 1.442695, %v426_v27  ;;  %v1315_v36 = vpop.eup %964 }
 0x2dc   :  { %v419_v32 = vpop.xlane.xlu1 %418  ;;  %v411_v33 = vpop.xlane.xlu0 %410 }
 0x2dd   :  { %v427_v34 = vsub.f32 %v403_v2, %v419_v32  ;;  %v423_v35 = vsub.f32 %v1303_v54, %v411_v33  ;;  %970 = vpow2.f32 %v432_v30  ;;  %v495_v54 = vld [vmem:[#allocation10 + $0x58] sm:$0xff]  ;;  %v641_v30 = vld [vmem:[%s1377_s7] ss:$0 sm:$0xff]  ;;  %s1104_s7 = scalar_lea.vmem %s626_s25, 1024 }
 0x2de   :  { %972 = vpow2.f32 %v440_v31  ;;  %v906_v55 = vpack.c.bf16 %v495_v54, %v494_v53  ;;  %p1105_p12 = scmp.ne.s32.totalorder %s626_s25, %s1104_s7  ;;  %p1110_p0 = scmp.lt.s32.totalorder %s1104_s7, %s1104_s7 }
 0x2df   :  { %v434_v37 = vmul.f32 1.442695, %v423_v35  ;;  %444 = vadd.xlane.f32.xlu0 %v1315_v36  ;;  %v442_v38 = vmul.f32 1.442695, %v427_v34 }
 0x2e0   :  { %907 = vmatprep.subr.bf16.mxu0 %v906_v55  ;;  %923 = vmatprep.subr.bf16.mxu1 %v906_v55  ;;  %p1111_p1 = por %p1110_p0, %p1109_p13 }
 0x2e1   :  { %974 = vpow2.f32 %v434_v37  ;;  %909 = vmatpush3.bf16.msra.mxu0 %v906_v55  ;;  %931 = vmatpush3.bf16.msra.mxu1 %v906_v55 }
 0x2e2   :  { %v1318_v39 = vpop.eup %966  ;;  %976 = vpow2.f32 %v442_v38  ;;  %911 = vmatprep.subr.bf16.mxu0 %v910_v58  ;;  %924 = vmatprep.subr.bf16.mxu1 %v910_v58  ;;  %p1112_p2 = pnand %p1111_p1, %p1105_p12 }
 0x2e3   :  { %454 = vadd.xlane.f32.xlu1 %v1318_v39  ;;  %v1321_v40 = vpop.eup %968 }
 0x2e5   :  { %913 = vmatpush3.bf16.msra.mxu0 %v910_v58  ;;  %932 = vmatpush3.bf16.msra.mxu1 %v910_v58 }
 0x2e6   :  { %915 = vmatprep.subr.bf16.mxu0 %v914_v61  ;;  %925 = vmatprep.subr.bf16.mxu1 %v914_v61 }
 0x2e7   :  { %452 = vadd.xlane.f32.xlu1 %v1321_v40  ;;  %v1324_v43 = vpop.eup %970 }
 0x2e8   :  { %448 = vadd.xlane.f32.xlu0 %v1324_v43  ;;  %v1327_v45 = vpop.eup %972 }
 0x2e9   :  { %917 = vmatpush3.bf16.msra.mxu0 %v914_v61  ;;  %933 = vmatpush3.bf16.msra.mxu1 %v914_v61 }
 0x2eb   :  { %456 = vadd.xlane.f32.xlu1 %v1327_v45  ;;  %v1330_v48 = vpop.eup %974 }
 0x2ec   :  { %450 = vadd.xlane.f32.xlu0 %v1330_v48  ;;  %v1333_v52 = vpop.eup %976 }
 0x2ef   :  { %458 = vadd.xlane.f32.xlu1 %v1333_v52 }
 0x368   :  { %v447_v62 = vpop.xlane.xlu0 %446 }
 0x369   :  { %978 = vrcp.f32 %v447_v62 }
 0x36c   :  { %v445_v63 = vpop.xlane.xlu0 %444 }
 0x36d   :  { %980 = vrcp.f32 %v445_v63 }
 0x370   :  { %v455_v0 = vpop.xlane.xlu1 %454 }
 0x371   :  { %982 = vrcp.f32 %v455_v0 }
 0x373   :  { %v979_v1 = vpop.eup %978 }
 0x374   :  { %v453_v2 = vpop.xlane.xlu1 %452  ;;  %v469_v5 = vmul.f32 %v979_v1, %v1311_v29 }
 0x375   :  { %984 = vrcp.f32 %v453_v2  ;;  %v449_v3 = vpop.xlane.xlu0 %448 }
 0x376   :  { %986 = vrcp.f32 %v449_v3  ;;  %v477_v10 = vmul.f32 %v469_v5, %v1287_v49 }
 0x377   :  { %v981_v4 = vpop.eup %980 }
 0x378   :  { %v457_v6 = vpop.xlane.xlu1 %456  ;;  %v468_v7 = vmul.f32 %v981_v4, %v1315_v36 }
 0x379   :  { %988 = vrcp.f32 %v457_v6  ;;  %v451_v8 = vpop.xlane.xlu0 %450 }
 0x37a   :  { %v476_v9 = vmul.f32 %v468_v7, %v1287_v49  ;;  %990 = vrcp.f32 %v451_v8 }
 0x37b   :  { %v983_v11 = vpop.eup %982 }
 0x37c   :  { %v459_v12 = vpop.xlane.xlu1 %458  ;;  %818 = vmatprep.mubr.f32.mxu0 %v476_v9  ;;  %v473_v14 = vmul.f32 %v983_v11, %v1318_v39 }
 0x37d   :  { %992 = vrcp.f32 %v459_v12  ;;  %819 = vmatmul.mubr.f32.vlgmr.msra.gmra.mrb[2].mxu0 %v477_v10 }
 0x37e   :  { %v481_v20 = vmul.f32 %v473_v14, %v1289_v50 }
 0x37f   :  { %v985_v13 = vpop.eup %984 }
 0x380   :  { %v472_v15 = vmul.f32 %v985_v13, %v1321_v40  ;;  %v987_v16 = vpop.eup %986 }
 0x381   :  { %v470_v18 = vmul.f32 %v987_v16, %v1324_v43 }
 0x382   :  { %v480_v17 = vmul.f32 %v472_v15, %v1289_v50 }
 0x383   :  { %v989_v19 = vpop.eup %988  ;;  %v478_v21 = vmul.f32 %v470_v18, %v1287_v49 }
 0x384   :  { %824 = vmatprep.mubr.f32.mxu1 %v480_v17  ;;  %v474_v22 = vmul.f32 %v989_v19, %v1327_v45  ;;  %v991_v23 = vpop.eup %990 }
 0x385   :  { %825 = vmatmul.mubr.f32.vlgmr.msra.gmra.mrb[8].mxu1 %v481_v20  ;;  %821 = vmatprep.mubr.f32.mxu0 %v478_v21  ;;  %v471_v25 = vmul.f32 %v991_v23, %v1330_v48 }
 0x386   :  { %v482_v24 = vmul.f32 %v474_v22, %v1289_v50 }
 0x387   :  { %v993_v26 = vpop.eup %992  ;;  %v479_v27 = vmul.f32 %v471_v25, %v1287_v49 }
 0x388   :  { %827 = vmatprep.mubr.f32.mxu1 %v482_v24  ;;  %v475_v28 = vmul.f32 %v993_v26, %v1333_v52 }
 0x389   :  { %822 = vmatmul.mubr.f32.gmra.mrb[4].mxu0 %v479_v27 }
 0x38a   :  { %v483_v29 = vmul.f32 %v475_v28, %v1289_v50 }
 0x38c   :  { %828 = vmatmul.mubr.f32.gmra.mrb[10].mxu1 %v483_v29 }
 0x450   :  { %v820_v31 = vpop.f32.mrb[2].mxu0 }
 0x451   :  { %v579_v32 = vadd.f32 %v820_v31, %v641_v30  ;;  %v573_v33 = vpop.f32.mrb[3].mxu0 }
 0x452   :  { %v574_v34 = vadd.f32 %v641_v30, %v573_v33 }
 0x453   :  { %613 = vst [vmem:[#allocation11 + $0x8] sm:$0xff] %v579_v32 }
 0x454   :  { %612 = vst [vmem:[#allocation11] sm:$0xff] %v574_v34 }
 0x458   :  { %v826_v35 = vpop.f32.mrb[8].mxu1 }
 0x459   :  { %v599_v36 = vadd.f32 %v826_v35, %v641_v30  ;;  %v593_v37 = vpop.f32.mrb[9].mxu1 }
 0x45a   :  { %v594_v49 = vadd.f32 %v641_v30, %v593_v37 }
 0x45b   :  { %617 = vst [vmem:[#allocation11 + $0x28] sm:$0xff] %v599_v36 }
 0x45c   :  { %616 = vst [vmem:[#allocation11 + $0x20] sm:$0xff] %v594_v49  ;;  %v823_v38 = vpop.f32.mrb[4].mxu0 }
 0x45d   :  { %v589_v39 = vadd.f32 %v823_v38, %v641_v30  ;;  %v583_v50 = vpop.f32.mrb[5].mxu0 }
 0x45e   :  { %v584_v40 = vadd.f32 %v641_v30, %v583_v50 }
 0x45f   :  { %v829_v41 = vpop.f32.mrb[10].mxu1  ;;  %615 = vst [vmem:[#allocation11 + $0x18] sm:$0xff] %v589_v39 }
 0x460   :  { %v609_v42 = vadd.f32 %v829_v41, %v641_v30  ;;  %v603_v43 = vpop.f32.mrb[11].mxu1  ;;  %614 = vst [vmem:[#allocation11 + $0x10] sm:$0xff] %v584_v40 }
 0x461   :  { %v604_v44 = vadd.f32 %v641_v30, %v603_v43 }
 0x462   :  { %619 = vst [vmem:[#allocation11 + $0x38] sm:$0xff] %v609_v42 }
 0x463   :  { %618 = vst [vmem:[#allocation11 + $0x30] sm:$0xff] %v604_v44 }
 0x464   :  { %1115 = shalt.err (!%p1112_p2)
}
 0x465   :  { %s1116_s29 = scalar_lea.hbm %s1378_s8, 1024 }
 0x466   :  { %p1117_p3 = scmp.ne.s32.totalorder %s1378_s8, %s1116_s29  ;;  %p1120_p4 = scmp.lt.u32.totalorder %s1116_s29, %s1378_s8 }
 0x468   :  { %p1122_p5 = pnand %p1120_p4, %p1117_p3 }
 0x46a   :  { %1125 = shalt.err (!%p1122_p5)
}
 0x46b   :  { %631 = dma.vmem_to_hbm [thread:$0]  %s626_s25, 1024, %s1378_s8, [#allocation4], %s1136_s17, %s1136_s17, %s1137_s18  }
 0x46c   :  { %1132 = dma.done.wait [#allocation4], 1024  }
 0x46d   :  { %1133 = vsyncadd [#allocation4], 4294966272 }
 0x46e   :  { %635 = vsyncpa [#allocation3], 1 }
 0x46f   :  { %636 = vsyncpa [#allocation6], 1 }
 0x470   :  { %637 = vsyncpa [#allocation9], 1 }
 0x471   :  { %638 = vsyncpa [#allocation4], 1 }

</bundles_post_ra>
